<compile_context>
chip_gen: v6e
topology: v6e:2x2x1
jax: 0.10.0
libtpu: 0.0.40
codegen_flags: <defaults>
</compile_context>

<pallas_src>
import functools
import math

import jax
import jax.numpy as jnp
from jax.experimental import pallas as pl
from jax.experimental.pallas import tpu as pltpu

LN_EPS = 1e-5  # torch.nn.LayerNorm default eps


def _layer_norm(x, g, b):
    mu = jnp.mean(x, axis=-1, keepdims=True)
    var = jnp.mean((x - mu) ** 2, axis=-1, keepdims=True)
    return (x - mu) * jax.lax.rsqrt(var + LN_EPS) * g + b


def _gelu_tanh(x):
    # tanh-based GELU (max abs deviation from exact erf GELU ~3e-4); tanh runs on
    # the EUP instead of a long erf polynomial on the VALU.
    c = math.sqrt(2.0 / math.pi)
    return 0.5 * x * (1.0 + jnp.tanh(c * (x + 0.044715 * (x * x * x))))


def _liquid_mem_attn_kernel(x_ref, mem_ref, pp_ref, maskv_ref,
                            wq_ref, wk_ref, wv_ref, wo_ref, w1_ref, w2_ref,
                            out_ref, *, BB, S, M, H, hd, Din, Dm):
    f32 = jnp.float32
    bf16 = jnp.bfloat16
    dot = functools.partial(jnp.dot, preferred_element_type=f32)

    x = x_ref[...]            # [BB*S, Din]  f32
    mem = mem_ref[...]        # [BB*M, Dm]   f32
    maskv = maskv_ref[...]    # [H*M, Dm]    bf16 0/1 head selector (precomputed)

    # Packed small params: one [10, W] f32 slab, static slices.
    bq = pp_ref[0:1, :Dm]
    bk = pp_ref[1:2, :Dm]
    bv = pp_ref[2:3, :Dm]
    bo = pp_ref[3:4, :Din]
    ln1g = pp_ref[4:5, :Din]
    ln1b = pp_ref[5:6, :Din]
    ln2g = pp_ref[6:7, :Din]
    ln2b = pp_ref[7:8, :Din]
    b1 = pp_ref[8:9, :4 * Din]
    b2 = pp_ref[9:10, :Din]

    # --- LayerNorm 1 + Q/K/V projections (bf16 operands, f32 accumulation) ---
    xn = _layer_norm(x, ln1g, ln1b)
    scale = 1.0 / math.sqrt(hd)
    q = (dot(xn.astype(bf16), wq_ref[...]) + bq) * scale   # [BB*S, Dm] pre-scaled
    k = dot(mem.astype(bf16), wk_ref[...]) + bk            # [BB*M, Dm]
    v = dot(mem.astype(bf16), wv_ref[...]) + bv            # [BB*M, Dm]

    # NOTE: the continuous-time timescale bias (wt/bt branch) is constant along
    # the softmax axis -> cannot change the attention weights -> omitted.

    # --- block-diagonal multi-head attention, batched over BB ---
    HM = H * M
    q3 = q.astype(bf16).reshape(BB, S, Dm)
    k3 = k.astype(bf16).reshape(BB, M, Dm)
    v3 = v.astype(bf16).reshape(BB, M, Dm)
    k_rep = jnp.concatenate([k3] * H, axis=1) if H > 1 else k3   # [BB, HM, Dm]
    v_rep = jnp.concatenate([v3] * H, axis=1) if H > 1 else v3   # [BB, HM, Dm]
    kbd = k_rep * maskv        # bf16 block-diagonal keys   (no transpose needed)
    vbd = v_rep * maskv        # bf16 block-diagonal values

    # Scores for ALL heads via one batched matmul, contraction over full Dm.
    s = jnp.einsum('bsd,bcd->bsc', q3, kbd,
                   preferred_element_type=f32)                   # [BB, S, HM]

    # Per-head softmax: per-head max & denominator via lane-slice reductions.
    mb = jnp.concatenate(
        [jnp.broadcast_to(
            jnp.max(s[..., h * M:(h + 1) * M], axis=-1, keepdims=True), (BB, S, M))
         for h in range(H)], axis=-1)                            # [BB, S, HM]
    e = jnp.exp(s - mb)                                          # f32, per-head max=1
    den = jnp.concatenate(
        [jnp.broadcast_to(
            jnp.sum(e[..., h * M:(h + 1) * M], axis=-1, keepdims=True), (BB, S, hd))
         for h in range(H)], axis=-1)                            # [BB, S, Dm], >= 1
    num = jnp.einsum('bsc,bcd->bsd', e.astype(bf16), vbd,
                     preferred_element_type=f32)                 # [BB, S, Dm]
    attn = (num * pl.reciprocal(den, approx=True)).reshape(BB * S, Dm)

    # --- output projection + residual 1 (dropout = identity) ---
    x1 = x + dot(attn.astype(bf16), wo_ref[...]) + bo

    # --- LayerNorm 2 + GELU FFN + residual 2 ---
    xn2 = _layer_norm(x1, ln2g, ln2b)
    hact = _gelu_tanh(dot(xn2.astype(bf16), w1_ref[...]) + b1)   # [BB*S, 4*Din]
    y = x1 + dot(hact.astype(bf16), w2_ref[...]) + b2            # [BB*S, Din]
    out_ref[...] = y.astype(out_ref.dtype)


def liquid_memory_attention(x, memory, params, num_heads):
    B, S, Din = x.shape
    _, M, Dm = memory.shape
    assert Dm % num_heads == 0
    H = num_heads
    hd = Dm // H
    HM = H * M
    f32, bf16 = jnp.float32, jnp.bfloat16

    # Rows per grid step: target ~256 rows (amortize per-step overhead, fill the
    # MXU LHS), but keep >= 2 grid steps when B >= 2 so both v7x TensorCores get
    # work, and BB must divide B.
    BB = max(1, min(B, max(1, 256 // max(S, 1))))
    while B % BB:
        BB -= 1
    while BB > 1 and B // BB < 2:
        BB -= 1
        while B % BB:
            BB -= 1
    grid = (B // BB,)

    # Pack the 10 small per-feature parameter vectors into one f32 slab (one DMA).
    W = max(Dm, Din, 4 * Din)

    def _row(v):
        return jnp.pad(v.astype(f32), (0, W - v.shape[0]))[None, :]

    packed = jnp.concatenate([
        _row(params["bq"]), _row(params["bk"]), _row(params["bv"]), _row(params["bo"]),
        _row(params["ln1_g"]), _row(params["ln1_b"]),
        _row(params["ln2_g"]), _row(params["ln2_b"]),
        _row(params["b1"]), _row(params["b2"]),
    ], axis=0)                                     # [10, W]

    # 0/1 head-selector mask, built once on the host, shipped as bf16 (exact).
    head_of_row = (jnp.arange(HM, dtype=jnp.int32) // M)[:, None]
    head_of_col = (jnp.arange(Dm, dtype=jnp.int32) // hd)[None, :]
    maskv = (head_of_row == head_of_col).astype(bf16)            # [HM, Dm]

    # Big weights: pre-transpose to [in, out] and ship as bf16 (f32 accumulation
    # in-kernel).  wt/bt (timescale head) are not needed: their bias is constant
    # along the softmax axis (mathematical no-op in this forward).
    weights = [
        params["wq"].T.astype(bf16), params["wk"].T.astype(bf16),
        params["wv"].T.astype(bf16), params["wo"].T.astype(bf16),
        params["w1"].T.astype(bf16), params["w2"].T.astype(bf16),
    ]

    x2d = x.reshape(B * S, Din)
    mem2d = memory.reshape(B * M, Dm)

    def _full(arr):
        return pl.BlockSpec(arr.shape, lambda i: (0, 0))

    in_specs = [
        pl.BlockSpec((BB * S, Din), lambda i: (i, 0)),
        pl.BlockSpec((BB * M, Dm), lambda i: (i, 0)),
        _full(packed),
        _full(maskv),
    ] + [_full(w) for w in weights]
    out_spec = pl.BlockSpec((BB * S, Din), lambda i: (i, 0))

    # Explicit VMEM budget from actual buffer sizes (defaults: 16 MiB v5e,
    # 32 MiB v6e/v7x).  Resident operands counted twice (default double-buffer).
    rows = BB * S
    bytes_resident = 2 * (sum(int(w.size) * 2 for w in weights)
                          + int(packed.size) * 4 + int(maskv.size) * 2)
    bytes_blocks = 2 * 4 * (rows * Din + BB * M * Dm + rows * Din)
    bytes_act = (4 * rows * max(Dm, Din) * 4      # xn / q / attn / x1 style f32
                 + 2 * rows * 4 * Din * 4          # FFN hidden f32
                 + 2 * BB * HM * Dm * 2            # kbd / vbd bf16
                 + 3 * rows * HM * 4)              # s / mb / e f32
    vmem_limit = int(min(64 * 2 ** 20,
                         max(32 * 2 ** 20,
                             2 * (bytes_resident + bytes_blocks + bytes_act))))

    kernel = functools.partial(_liquid_mem_attn_kernel,
                               BB=BB, S=S, M=M, H=H, hd=hd, Din=Din, Dm=Dm)
    out2d = pl.pallas_call(
        kernel,
        out_shape=jax.ShapeDtypeStruct((B * S, Din), x.dtype),
        grid_spec=pltpu.PrefetchScalarGridSpec(
            num_scalar_prefetch=0,
            grid=grid,
            in_specs=in_specs,
            out_specs=out_spec,
        ),
        compiler_params=pltpu.CompilerParams(
            dimension_semantics=("parallel",),
            vmem_limit_bytes=vmem_limit,
        ),
    )(x2d, mem2d, packed, maskv, *weights)
    return out2d.reshape(B, S, Din)


def reference_forward(x, memory, p, num_heads):
    """Plain-JAX reference mirroring the PyTorch forward (eval mode, exact GELU)."""
    B, S, Din = x.shape
    _, M, Dm = memory.shape
    hd = Dm // num_heads

    def ln(v, g, b):
        mu = v.mean(-1, keepdims=True)
        var = ((v - mu) ** 2).mean(-1, keepdims=True)
        return (v - mu) / jnp.sqrt(var + LN_EPS) * g + b

    xn = ln(x, p["ln1_g"], p["ln1_b"])
    q = (xn @ p["wq"].T + p["bq"]).reshape(B, S, num_heads, hd).transpose(0, 2, 1, 3)
    k = (memory @ p["wk"].T + p["bk"]).reshape(B, M, num_heads, hd).transpose(0, 2, 1, 3)
    v = (memory @ p["wv"].T + p["bv"]).reshape(B, M, num_heads, hd).transpose(0, 2, 1, 3)
    scores = jnp.einsum("bhsd,bhmd->bhsm", q, k) / math.sqrt(hd)
    ts = jax.nn.softplus(xn @ p["wt"].T + p["bt"]).mean(axis=1)  # [B, H]
    scores = scores + ts[:, :, None, None] * 0.1
    w = jax.nn.softmax(scores, axis=-1)
    attn = jnp.einsum("bhsm,bhmd->bhsd", w, v).transpose(0, 2, 1, 3).reshape(B, S, Dm)
    x1 = x + (attn @ p["wo"].T + p["bo"])
    xn2 = ln(x1, p["ln2_g"], p["ln2_b"])
    ff = jax.nn.gelu(xn2 @ p["w1"].T + p["b1"], approximate=False) @ p["w2"].T + p["b2"]
    return x1 + ff


if __name__ == "__main__":
    # small, module-consistent shapes
    B, S, M = 2, 8, 8
    INPUT_DIM, MEMORY_DIM, NUM_HEADS = 32, 32, 4

    key = jax.random.PRNGKey(0)
    ks = jax.random.split(key, 10)
    std = 0.02
    f32 = jnp.float32

    params = {
        "wq": std * jax.random.normal(ks[0], (MEMORY_DIM, INPUT_DIM), f32),
        "bq": jnp.zeros((MEMORY_DIM,), f32),
        "wk": std * jax.random.normal(ks[1], (MEMORY_DIM, MEMORY_DIM), f32),
        "bk": jnp.zeros((MEMORY_DIM,), f32),
        "wv": std * jax.random.normal(ks[2], (MEMORY_DIM, MEMORY_DIM), f32),
        "bv": jnp.zeros((MEMORY_DIM,), f32),
        "wo": std * jax.random.normal(ks[3], (INPUT_DIM, MEMORY_DIM), f32),
        "bo": jnp.zeros((INPUT_DIM,), f32),
        "wt": std * jax.random.normal(ks[4], (NUM_HEADS, INPUT_DIM), f32),
        "bt": jnp.zeros((NUM_HEADS,), f32),
        "ln1_g": jnp.ones((INPUT_DIM,), f32),
        "ln1_b": jnp.zeros((INPUT_DIM,), f32),
        "ln2_g": jnp.ones((INPUT_DIM,), f32),
        "ln2_b": jnp.zeros((INPUT_DIM,), f32),
        "w1": std * jax.random.normal(ks[5], (4 * INPUT_DIM, INPUT_DIM), f32),
        "b1": jnp.zeros((4 * INPUT_DIM,), f32),
        "w2": std * jax.random.normal(ks[6], (INPUT_DIM, 4 * INPUT_DIM), f32),
        "b2": jnp.zeros((INPUT_DIM,), f32),
    }

    x = jax.random.normal(ks[7], (B, S, INPUT_DIM), f32)
    memory = jax.random.normal(ks[8], (B, M, MEMORY_DIM), f32)

    out = liquid_memory_attention(x, memory, params, NUM_HEADS)
    out = jax.block_until_ready(out)

    ref = reference_forward(x, memory, params, NUM_HEADS)
    max_err = float(jnp.max(jnp.abs(out - ref)))
    # bf16 matmul operands + tanh-GELU + approx reciprocal -> allow a few e-3.
    if max_err > 5e-3:
        raise AssertionError(f"kernel/reference mismatch, max abs err = {max_err}")

    print("KERNEL_OK")
</pallas_src>

<mosaic_0001>
module attributes {stable_mosaic.version = 11 : i64} {
  func.func @_liquid_mem_attn_kernel(%arg0: i32, %arg1: memref<8x32xf32, #tpu.memory_space<vmem>>, %arg2: memref<8x32xf32, #tpu.memory_space<vmem>>, %arg3: memref<10x128xf32, #tpu.memory_space<vmem>>, %arg4: memref<32x32xbf16, #tpu.memory_space<vmem>>, %arg5: memref<32x32xbf16, #tpu.memory_space<vmem>>, %arg6: memref<32x32xbf16, #tpu.memory_space<vmem>>, %arg7: memref<32x32xbf16, #tpu.memory_space<vmem>>, %arg8: memref<32x32xbf16, #tpu.memory_space<vmem>>, %arg9: memref<32x128xbf16, #tpu.memory_space<vmem>>, %arg10: memref<128x32xbf16, #tpu.memory_space<vmem>>, %arg11: memref<8x32xf32, #tpu.memory_space<vmem>>) attributes {dimension_semantics = [#tpu.dimension_semantics<parallel>], iteration_bounds = array<i64: 2>, scalar_prefetch = 0 : i64, scratch_operands = 0 : i64, tpu.core_type = #tpu.core_type<tc>, window_params = [{transform_indices = @transform_0, window_bounds = array<i64: 8, 32>}, {transform_indices = @transform_1, window_bounds = array<i64: 8, 32>}, {pipeline_mode = #tpu.pipeline_mode<synchronous>, transform_indices = @transform_2, window_bounds = array<i64: 10, 128>}, {pipeline_mode = #tpu.pipeline_mode<synchronous>, transform_indices = @transform_3, window_bounds = array<i64: 32, 32>}, {pipeline_mode = #tpu.pipeline_mode<synchronous>, transform_indices = @transform_4, window_bounds = array<i64: 32, 32>}, {pipeline_mode = #tpu.pipeline_mode<synchronous>, transform_indices = @transform_5, window_bounds = array<i64: 32, 32>}, {pipeline_mode = #tpu.pipeline_mode<synchronous>, transform_indices = @transform_6, window_bounds = array<i64: 32, 32>}, {pipeline_mode = #tpu.pipeline_mode<synchronous>, transform_indices = @transform_7, window_bounds = array<i64: 32, 32>}, {pipeline_mode = #tpu.pipeline_mode<synchronous>, transform_indices = @transform_8, window_bounds = array<i64: 32, 128>}, {pipeline_mode = #tpu.pipeline_mode<synchronous>, transform_indices = @transform_9, window_bounds = array<i64: 128, 32>}, {transform_indices = @transform_10, window_bounds = array<i64: 8, 32>}]} {
    %c0 = arith.constant 0 : index
    %c0_0 = arith.constant 0 : index
    %0 = vector.load %arg1[%c0, %c0_0] : memref<8x32xf32, #tpu.memory_space<vmem>>, vector<8x32xf32>
    %c0_1 = arith.constant 0 : index
    %c0_2 = arith.constant 0 : index
    %1 = vector.load %arg2[%c0_1, %c0_2] : memref<8x32xf32, #tpu.memory_space<vmem>>, vector<8x32xf32>
    %c0_3 = arith.constant 0 : index
    %c0_4 = arith.constant 0 : index
    %2 = vector.load %arg4[%c0_3, %c0_4] : memref<32x32xbf16, #tpu.memory_space<vmem>>, vector<32x32xbf16>
    %c0_5 = arith.constant 0 : index
    %c0_6 = arith.constant 0 : index
    %3 = vector.load %arg3[%c0_5, %c0_6] : memref<10x128xf32, #tpu.memory_space<vmem>>, vector<1x32xf32>
    %c1 = arith.constant 1 : index
    %c0_7 = arith.constant 0 : index
    %4 = vector.load %arg3[%c1, %c0_7] : memref<10x128xf32, #tpu.memory_space<vmem>>, vector<1x32xf32>
    %c2 = arith.constant 2 : index
    %c0_8 = arith.constant 0 : index
    %5 = vector.load %arg3[%c2, %c0_8] : memref<10x128xf32, #tpu.memory_space<vmem>>, vector<1x32xf32>
    %c3 = arith.constant 3 : index
    %c0_9 = arith.constant 0 : index
    %6 = vector.load %arg3[%c3, %c0_9] : memref<10x128xf32, #tpu.memory_space<vmem>>, vector<1x32xf32>
    %c4 = arith.constant 4 : index
    %c0_10 = arith.constant 0 : index
    %7 = vector.load %arg3[%c4, %c0_10] : memref<10x128xf32, #tpu.memory_space<vmem>>, vector<1x32xf32>
    %c5 = arith.constant 5 : index
    %c0_11 = arith.constant 0 : index
    %8 = vector.load %arg3[%c5, %c0_11] : memref<10x128xf32, #tpu.memory_space<vmem>>, vector<1x32xf32>
    %c6 = arith.constant 6 : index
    %c0_12 = arith.constant 0 : index
    %9 = vector.load %arg3[%c6, %c0_12] : memref<10x128xf32, #tpu.memory_space<vmem>>, vector<1x32xf32>
    %c7 = arith.constant 7 : index
    %c0_13 = arith.constant 0 : index
    %10 = vector.load %arg3[%c7, %c0_13] : memref<10x128xf32, #tpu.memory_space<vmem>>, vector<1x32xf32>
    %c8 = arith.constant 8 : index
    %c0_14 = arith.constant 0 : index
    %11 = vector.load %arg3[%c8, %c0_14] : memref<10x128xf32, #tpu.memory_space<vmem>>, vector<1x128xf32>
    %c9 = arith.constant 9 : index
    %c0_15 = arith.constant 0 : index
    %12 = vector.load %arg3[%c9, %c0_15] : memref<10x128xf32, #tpu.memory_space<vmem>>, vector<1x32xf32>
    %cst = arith.constant dense<0.000000e+00> : vector<8xf32>
    %13 = vector.multi_reduction <add>, %0, %cst [1] : vector<8x32xf32> to vector<8xf32>
    %14 = vector.shape_cast %13 : vector<8xf32> to vector<8x1xf32>
    %cst_16 = arith.constant 3.200000e+01 : f32
    %15 = vector.broadcast %cst_16 : f32 to vector<8x1xf32>
    %16 = arith.divf %14, %15 : vector<8x1xf32>
    %17 = vector.broadcast %16 : vector<8x1xf32> to vector<8x32xf32>
    %18 = arith.subf %0, %17 : vector<8x32xf32>
    %19 = arith.mulf %18, %18 : vector<8x32xf32>
    %cst_17 = arith.constant dense<0.000000e+00> : vector<8xf32>
    %20 = vector.multi_reduction <add>, %19, %cst_17 [1] : vector<8x32xf32> to vector<8xf32>
    %21 = vector.shape_cast %20 : vector<8xf32> to vector<8x1xf32>
    %cst_18 = arith.constant 3.200000e+01 : f32
    %22 = vector.broadcast %cst_18 : f32 to vector<8x1xf32>
    %23 = arith.divf %21, %22 : vector<8x1xf32>
    %24 = vector.broadcast %16 : vector<8x1xf32> to vector<8x32xf32>
    %25 = arith.subf %0, %24 : vector<8x32xf32>
    %cst_19 = arith.constant 9.99999974E-6 : f32
    %26 = vector.broadcast %cst_19 : f32 to vector<8x1xf32>
    %27 = arith.addf %23, %26 : vector<8x1xf32>
    %28 = math.rsqrt %27 : vector<8x1xf32>
    %29 = vector.broadcast %28 : vector<8x1xf32> to vector<8x32xf32>
    %30 = arith.mulf %25, %29 : vector<8x32xf32>
    %31 = vector.broadcast %7 : vector<1x32xf32> to vector<8x32xf32>
    %32 = arith.mulf %30, %31 : vector<8x32xf32>
    %33 = vector.broadcast %8 : vector<1x32xf32> to vector<8x32xf32>
    %34 = arith.addf %32, %33 : vector<8x32xf32>
    %35 = arith.truncf %34 : vector<8x32xf32> to vector<8x32xbf16>
    %c0_20 = arith.constant 0 : index
    %c0_21 = arith.constant 0 : index
    %36 = vector.load %arg5[%c0_20, %c0_21] : memref<32x32xbf16, #tpu.memory_space<vmem>>, vector<32x32xbf16>
    %cst_22 = arith.constant dense<0.000000e+00> : vector<8x32xf32>
    %37 = tpu.matmul %35, %36, %cst_22 {dimension_numbers = #tpu.dot_dimension_numbers<[1], [0], [0], [1], [0, 0, 1, 1], [], []>} : vector<8x32xbf16>, vector<32x32xbf16>, vector<8x32xf32> -> vector<8x32xf32>
    %38 = vector.broadcast %3 : vector<1x32xf32> to vector<8x32xf32>
    %39 = arith.addf %37, %38 : vector<8x32xf32>
    %cst_23 = arith.constant 0.353553385 : f32
    %40 = vector.broadcast %cst_23 : f32 to vector<8x32xf32>
    %41 = arith.mulf %39, %40 : vector<8x32xf32>
    %42 = arith.truncf %1 : vector<8x32xf32> to vector<8x32xbf16>
    %c0_24 = arith.constant 0 : index
    %c0_25 = arith.constant 0 : index
    %43 = vector.load %arg6[%c0_24, %c0_25] : memref<32x32xbf16, #tpu.memory_space<vmem>>, vector<32x32xbf16>
    %cst_26 = arith.constant dense<0.000000e+00> : vector<8x32xf32>
    %44 = tpu.matmul %42, %43, %cst_26 {dimension_numbers = #tpu.dot_dimension_numbers<[1], [0], [0], [1], [0, 0, 1, 1], [], []>} : vector<8x32xbf16>, vector<32x32xbf16>, vector<8x32xf32> -> vector<8x32xf32>
    %45 = vector.broadcast %4 : vector<1x32xf32> to vector<8x32xf32>
    %46 = arith.addf %44, %45 : vector<8x32xf32>
    %47 = arith.truncf %1 : vector<8x32xf32> to vector<8x32xbf16>
    %c0_27 = arith.constant 0 : index
    %c0_28 = arith.constant 0 : index
    %48 = vector.load %arg7[%c0_27, %c0_28] : memref<32x32xbf16, #tpu.memory_space<vmem>>, vector<32x32xbf16>
    %cst_29 = arith.constant dense<0.000000e+00> : vector<8x32xf32>
    %49 = tpu.matmul %47, %48, %cst_29 {dimension_numbers = #tpu.dot_dimension_numbers<[1], [0], [0], [1], [0, 0, 1, 1], [], []>} : vector<8x32xbf16>, vector<32x32xbf16>, vector<8x32xf32> -> vector<8x32xf32>
    %50 = vector.broadcast %5 : vector<1x32xf32> to vector<8x32xf32>
    %51 = arith.addf %49, %50 : vector<8x32xf32>
    %52 = arith.truncf %41 : vector<8x32xf32> to vector<8x32xbf16>
    %53 = vector.shape_cast %52 : vector<8x32xbf16> to vector<1x8x32xbf16>
    %54 = arith.truncf %46 : vector<8x32xf32> to vector<8x32xbf16>
    %55 = vector.shape_cast %54 : vector<8x32xbf16> to vector<1x8x32xbf16>
    %56 = arith.truncf %51 : vector<8x32xf32> to vector<8x32xbf16>
    %57 = vector.shape_cast %56 : vector<8x32xbf16> to vector<1x8x32xbf16>
    %58 = tpu.concatenate %55, %55, %55, %55 in 1 : vector<1x8x32xbf16>, vector<1x8x32xbf16>, vector<1x8x32xbf16>, vector<1x8x32xbf16> -> vector<1x32x32xbf16>
    %59 = tpu.concatenate %57, %57, %57, %57 in 1 : vector<1x8x32xbf16>, vector<1x8x32xbf16>, vector<1x8x32xbf16>, vector<1x8x32xbf16> -> vector<1x32x32xbf16>
    %60 = vector.shape_cast %2 : vector<32x32xbf16> to vector<1x32x32xbf16>
    %61 = arith.mulf %58, %60 : vector<1x32x32xbf16>
    %62 = vector.shape_cast %2 : vector<32x32xbf16> to vector<1x32x32xbf16>
    %63 = arith.mulf %59, %62 : vector<1x32x32xbf16>
    "tpu.trace_start"() <{level = 10 : i32, message = "bsd,bcd->bsc"}> : () -> ()
    %cst_30 = arith.constant dense<0.000000e+00> : vector<1x8x32xf32>
    %64 = tpu.matmul %53, %61, %cst_30 {dimension_numbers = #tpu.dot_dimension_numbers<[2], [2], [1], [1], [0, 0, 0, 1, 1, 1], [0], [0]>} : vector<1x8x32xbf16>, vector<1x32x32xbf16>, vector<1x8x32xf32> -> vector<1x8x32xf32>
    "tpu.trace_stop"() : () -> ()
    %65 = vector.extract_strided_slice %64 {offsets = [0, 0, 0], sizes = [1, 8, 8], strides = [1, 1, 1]} : vector<1x8x32xf32> to vector<1x8x8xf32>
    %cst_31 = arith.constant dense<0xFF800000> : vector<1x8xf32>
    %66 = vector.multi_reduction <maximumf>, %65, %cst_31 [2] : vector<1x8x8xf32> to vector<1x8xf32>
    %67 = vector.shape_cast %66 : vector<1x8xf32> to vector<1x8x1xf32>
    %68 = vector.shape_cast %67 : vector<1x8x1xf32> to vector<1x8x1xf32>
    %69 = vector.broadcast %68 : vector<1x8x1xf32> to vector<1x8x8xf32>
    %70 = vector.extract_strided_slice %64 {offsets = [0, 0, 8], sizes = [1, 8, 8], strides = [1, 1, 1]} : vector<1x8x32xf32> to vector<1x8x8xf32>
    %cst_32 = arith.constant dense<0xFF800000> : vector<1x8xf32>
    %71 = vector.multi_reduction <maximumf>, %70, %cst_32 [2] : vector<1x8x8xf32> to vector<1x8xf32>
    %72 = vector.shape_cast %71 : vector<1x8xf32> to vector<1x8x1xf32>
    %73 = vector.shape_cast %72 : vector<1x8x1xf32> to vector<1x8x1xf32>
    %74 = vector.broadcast %73 : vector<1x8x1xf32> to vector<1x8x8xf32>
    %75 = vector.extract_strided_slice %64 {offsets = [0, 0, 16], sizes = [1, 8, 8], strides = [1, 1, 1]} : vector<1x8x32xf32> to vector<1x8x8xf32>
    %cst_33 = arith.constant dense<0xFF800000> : vector<1x8xf32>
    %76 = vector.multi_reduction <maximumf>, %75, %cst_33 [2] : vector<1x8x8xf32> to vector<1x8xf32>
    %77 = vector.shape_cast %76 : vector<1x8xf32> to vector<1x8x1xf32>
    %78 = vector.shape_cast %77 : vector<1x8x1xf32> to vector<1x8x1xf32>
    %79 = vector.broadcast %78 : vector<1x8x1xf32> to vector<1x8x8xf32>
    %80 = vector.extract_strided_slice %64 {offsets = [0, 0, 24], sizes = [1, 8, 8], strides = [1, 1, 1]} : vector<1x8x32xf32> to vector<1x8x8xf32>
    %cst_34 = arith.constant dense<0xFF800000> : vector<1x8xf32>
    %81 = vector.multi_reduction <maximumf>, %80, %cst_34 [2] : vector<1x8x8xf32> to vector<1x8xf32>
    %82 = vector.shape_cast %81 : vector<1x8xf32> to vector<1x8x1xf32>
    %83 = vector.shape_cast %82 : vector<1x8x1xf32> to vector<1x8x1xf32>
    %84 = vector.broadcast %83 : vector<1x8x1xf32> to vector<1x8x8xf32>
    %85 = tpu.concatenate %69, %74, %79, %84 in 2 : vector<1x8x8xf32>, vector<1x8x8xf32>, vector<1x8x8xf32>, vector<1x8x8xf32> -> vector<1x8x32xf32>
    %86 = arith.subf %64, %85 : vector<1x8x32xf32>
    %87 = math.exp %86 : vector<1x8x32xf32>
    %88 = vector.extract_strided_slice %87 {offsets = [0, 0, 0], sizes = [1, 8, 8], strides = [1, 1, 1]} : vector<1x8x32xf32> to vector<1x8x8xf32>
    %cst_35 = arith.constant dense<0.000000e+00> : vector<1x8xf32>
    %89 = vector.multi_reduction <add>, %88, %cst_35 [2] : vector<1x8x8xf32> to vector<1x8xf32>
    %90 = vector.shape_cast %89 : vector<1x8xf32> to vector<1x8x1xf32>
    %91 = vector.shape_cast %90 : vector<1x8x1xf32> to vector<1x8x1xf32>
    %92 = vector.broadcast %91 : vector<1x8x1xf32> to vector<1x8x8xf32>
    %93 = vector.extract_strided_slice %87 {offsets = [0, 0, 8], sizes = [1, 8, 8], strides = [1, 1, 1]} : vector<1x8x32xf32> to vector<1x8x8xf32>
    %cst_36 = arith.constant dense<0.000000e+00> : vector<1x8xf32>
    %94 = vector.multi_reduction <add>, %93, %cst_36 [2] : vector<1x8x8xf32> to vector<1x8xf32>
    %95 = vector.shape_cast %94 : vector<1x8xf32> to vector<1x8x1xf32>
    %96 = vector.shape_cast %95 : vector<1x8x1xf32> to vector<1x8x1xf32>
    %97 = vector.broadcast %96 : vector<1x8x1xf32> to vector<1x8x8xf32>
    %98 = vector.extract_strided_slice %87 {offsets = [0, 0, 16], sizes = [1, 8, 8], strides = [1, 1, 1]} : vector<1x8x32xf32> to vector<1x8x8xf32>
    %cst_37 = arith.constant dense<0.000000e+00> : vector<1x8xf32>
    %99 = vector.multi_reduction <add>, %98, %cst_37 [2] : vector<1x8x8xf32> to vector<1x8xf32>
    %100 = vector.shape_cast %99 : vector<1x8xf32> to vector<1x8x1xf32>
    %101 = vector.shape_cast %100 : vector<1x8x1xf32> to vector<1x8x1xf32>
    %102 = vector.broadcast %101 : vector<1x8x1xf32> to vector<1x8x8xf32>
    %103 = vector.extract_strided_slice %87 {offsets = [0, 0, 24], sizes = [1, 8, 8], strides = [1, 1, 1]} : vector<1x8x32xf32> to vector<1x8x8xf32>
    %cst_38 = arith.constant dense<0.000000e+00> : vector<1x8xf32>
    %104 = vector.multi_reduction <add>, %103, %cst_38 [2] : vector<1x8x8xf32> to vector<1x8xf32>
    %105 = vector.shape_cast %104 : vector<1x8xf32> to vector<1x8x1xf32>
    %106 = vector.shape_cast %105 : vector<1x8x1xf32> to vector<1x8x1xf32>
    %107 = vector.broadcast %106 : vector<1x8x1xf32> to vector<1x8x8xf32>
    %108 = tpu.concatenate %92, %97, %102, %107 in 2 : vector<1x8x8xf32>, vector<1x8x8xf32>, vector<1x8x8xf32>, vector<1x8x8xf32> -> vector<1x8x32xf32>
    %109 = arith.truncf %87 : vector<1x8x32xf32> to vector<1x8x32xbf16>
    "tpu.trace_start"() <{level = 10 : i32, message = "bsc,bcd->bsd"}> : () -> ()
    %cst_39 = arith.constant dense<0.000000e+00> : vector<1x8x32xf32>
    %110 = tpu.matmul %109, %63, %cst_39 {dimension_numbers = #tpu.dot_dimension_numbers<[2], [1], [1], [2], [0, 0, 0, 1, 1, 2], [0], [0]>} : vector<1x8x32xbf16>, vector<1x32x32xbf16>, vector<1x8x32xf32> -> vector<1x8x32xf32>
    "tpu.trace_stop"() : () -> ()
    %111 = tpu.reciprocal %108 {approx = true} : vector<1x8x32xf32> -> vector<1x8x32xf32>
    %112 = arith.mulf %110, %111 : vector<1x8x32xf32>
    %113 = vector.shape_cast %112 : vector<1x8x32xf32> to vector<8x32xf32>
    %114 = arith.truncf %113 : vector<8x32xf32> to vector<8x32xbf16>
    %c0_40 = arith.constant 0 : index
    %c0_41 = arith.constant 0 : index
    %115 = vector.load %arg8[%c0_40, %c0_41] : memref<32x32xbf16, #tpu.memory_space<vmem>>, vector<32x32xbf16>
    %cst_42 = arith.constant dense<0.000000e+00> : vector<8x32xf32>
    %116 = tpu.matmul %114, %115, %cst_42 {dimension_numbers = #tpu.dot_dimension_numbers<[1], [0], [0], [1], [0, 0, 1, 1], [], []>} : vector<8x32xbf16>, vector<32x32xbf16>, vector<8x32xf32> -> vector<8x32xf32>
    %117 = arith.addf %0, %116 : vector<8x32xf32>
    %118 = vector.broadcast %6 : vector<1x32xf32> to vector<8x32xf32>
    %119 = arith.addf %117, %118 : vector<8x32xf32>
    %cst_43 = arith.constant dense<0.000000e+00> : vector<8xf32>
    %120 = vector.multi_reduction <add>, %119, %cst_43 [1] : vector<8x32xf32> to vector<8xf32>
    %121 = vector.shape_cast %120 : vector<8xf32> to vector<8x1xf32>
    %cst_44 = arith.constant 3.200000e+01 : f32
    %122 = vector.broadcast %cst_44 : f32 to vector<8x1xf32>
    %123 = arith.divf %121, %122 : vector<8x1xf32>
    %124 = vector.broadcast %123 : vector<8x1xf32> to vector<8x32xf32>
    %125 = arith.subf %119, %124 : vector<8x32xf32>
    %126 = arith.mulf %125, %125 : vector<8x32xf32>
    %cst_45 = arith.constant dense<0.000000e+00> : vector<8xf32>
    %127 = vector.multi_reduction <add>, %126, %cst_45 [1] : vector<8x32xf32> to vector<8xf32>
    %128 = vector.shape_cast %127 : vector<8xf32> to vector<8x1xf32>
    %cst_46 = arith.constant 3.200000e+01 : f32
    %129 = vector.broadcast %cst_46 : f32 to vector<8x1xf32>
    %130 = arith.divf %128, %129 : vector<8x1xf32>
    %131 = vector.broadcast %123 : vector<8x1xf32> to vector<8x32xf32>
    %132 = arith.subf %119, %131 : vector<8x32xf32>
    %cst_47 = arith.constant 9.99999974E-6 : f32
    %133 = vector.broadcast %cst_47 : f32 to vector<8x1xf32>
    %134 = arith.addf %130, %133 : vector<8x1xf32>
    %135 = math.rsqrt %134 : vector<8x1xf32>
    %136 = vector.broadcast %135 : vector<8x1xf32> to vector<8x32xf32>
    %137 = arith.mulf %132, %136 : vector<8x32xf32>
    %138 = vector.broadcast %9 : vector<1x32xf32> to vector<8x32xf32>
    %139 = arith.mulf %137, %138 : vector<8x32xf32>
    %140 = vector.broadcast %10 : vector<1x32xf32> to vector<8x32xf32>
    %141 = arith.addf %139, %140 : vector<8x32xf32>
    %142 = arith.truncf %141 : vector<8x32xf32> to vector<8x32xbf16>
    %c0_48 = arith.constant 0 : index
    %c0_49 = arith.constant 0 : index
    %143 = vector.load %arg9[%c0_48, %c0_49] : memref<32x128xbf16, #tpu.memory_space<vmem>>, vector<32x128xbf16>
    %cst_50 = arith.constant dense<0.000000e+00> : vector<8x128xf32>
    %144 = tpu.matmul %142, %143, %cst_50 {dimension_numbers = #tpu.dot_dimension_numbers<[1], [0], [0], [1], [0, 0, 1, 1], [], []>} : vector<8x32xbf16>, vector<32x128xbf16>, vector<8x128xf32> -> vector<8x128xf32>
    %145 = vector.broadcast %11 : vector<1x128xf32> to vector<8x128xf32>
    %146 = arith.addf %144, %145 : vector<8x128xf32>
    %cst_51 = arith.constant 5.000000e-01 : f32
    %147 = vector.broadcast %cst_51 : f32 to vector<8x128xf32>
    %148 = arith.mulf %147, %146 : vector<8x128xf32>
    %149 = arith.mulf %146, %146 : vector<8x128xf32>
    %150 = arith.mulf %149, %146 : vector<8x128xf32>
    %cst_52 = arith.constant 4.471500e-02 : f32
    %151 = vector.broadcast %cst_52 : f32 to vector<8x128xf32>
    %152 = arith.mulf %151, %150 : vector<8x128xf32>
    %153 = arith.addf %146, %152 : vector<8x128xf32>
    %cst_53 = arith.constant 0.797884583 : f32
    %154 = vector.broadcast %cst_53 : f32 to vector<8x128xf32>
    %155 = arith.mulf %154, %153 : vector<8x128xf32>
    %156 = math.tanh %155 : vector<8x128xf32>
    %cst_54 = arith.constant 1.000000e+00 : f32
    %157 = vector.broadcast %cst_54 : f32 to vector<8x128xf32>
    %158 = arith.addf %157, %156 : vector<8x128xf32>
    %159 = arith.mulf %148, %158 : vector<8x128xf32>
    %160 = arith.truncf %159 : vector<8x128xf32> to vector<8x128xbf16>
    %c0_55 = arith.constant 0 : index
    %c0_56 = arith.constant 0 : index
    %161 = vector.load %arg10[%c0_55, %c0_56] : memref<128x32xbf16, #tpu.memory_space<vmem>>, vector<128x32xbf16>
    %cst_57 = arith.constant dense<0.000000e+00> : vector<8x32xf32>
    %162 = tpu.matmul %160, %161, %cst_57 {dimension_numbers = #tpu.dot_dimension_numbers<[1], [0], [0], [1], [0, 0, 1, 1], [], []>} : vector<8x128xbf16>, vector<128x32xbf16>, vector<8x32xf32> -> vector<8x32xf32>
    %163 = arith.addf %119, %162 : vector<8x32xf32>
    %164 = vector.broadcast %12 : vector<1x32xf32> to vector<8x32xf32>
    %165 = arith.addf %163, %164 : vector<8x32xf32>
    %c0_58 = arith.constant 0 : index
    %c0_59 = arith.constant 0 : index
    %166 = vector.load %arg11[%c0_58, %c0_59] : memref<8x32xf32, #tpu.memory_space<vmem>>, vector<8x32xf32>
    tpu.vector_store %arg11[%c0_58, %c0_59], %165 {strides = array<i32>} : memref<8x32xf32, #tpu.memory_space<vmem>>, vector<8x32xf32>,
    return
  }
  func.func @transform_0(%arg0: i32) -> (i32, i32) {
    %c0_i32 = arith.constant 0 : i32
    %c0_i32_0 = arith.constant 0 : i32
    return %arg0, %c0_i32 : i32, i32
  }
  func.func @transform_1(%arg0: i32) -> (i32, i32) {
    %c0_i32 = arith.constant 0 : i32
    %c0_i32_0 = arith.constant 0 : i32
    return %arg0, %c0_i32 : i32, i32
  }
  func.func @transform_2(%arg0: i32) -> (i32, i32) {
    %c0_i32 = arith.constant 0 : i32
    %c0_i32_0 = arith.constant 0 : i32
    %c0_i32_1 = arith.constant 0 : i32
    return %c0_i32, %c0_i32_0 : i32, i32
  }
  func.func @transform_3(%arg0: i32) -> (i32, i32) {
    %c0_i32 = arith.constant 0 : i32
    %c0_i32_0 = arith.constant 0 : i32
    %c0_i32_1 = arith.constant 0 : i32
    return %c0_i32, %c0_i32_0 : i32, i32
  }
  func.func @transform_4(%arg0: i32) -> (i32, i32) {
    %c0_i32 = arith.constant 0 : i32
    %c0_i32_0 = arith.constant 0 : i32
    %c0_i32_1 = arith.constant 0 : i32
    return %c0_i32, %c0_i32_0 : i32, i32
  }
  func.func @transform_5(%arg0: i32) -> (i32, i32) {
    %c0_i32 = arith.constant 0 : i32
    %c0_i32_0 = arith.constant 0 : i32
    %c0_i32_1 = arith.constant 0 : i32
    return %c0_i32, %c0_i32_0 : i32, i32
  }
  func.func @transform_6(%arg0: i32) -> (i32, i32) {
    %c0_i32 = arith.constant 0 : i32
    %c0_i32_0 = arith.constant 0 : i32
    %c0_i32_1 = arith.constant 0 : i32
    return %c0_i32, %c0_i32_0 : i32, i32
  }
  func.func @transform_7(%arg0: i32) -> (i32, i32) {
    %c0_i32 = arith.constant 0 : i32
    %c0_i32_0 = arith.constant 0 : i32
    %c0_i32_1 = arith.constant 0 : i32
    return %c0_i32, %c0_i32_0 : i32, i32
  }
  func.func @transform_8(%arg0: i32) -> (i32, i32) {
    %c0_i32 = arith.constant 0 : i32
    %c0_i32_0 = arith.constant 0 : i32
    %c0_i32_1 = arith.constant 0 : i32
    return %c0_i32, %c0_i32_0 : i32, i32
  }
  func.func @transform_9(%arg0: i32) -> (i32, i32) {
    %c0_i32 = arith.constant 0 : i32
    %c0_i32_0 = arith.constant 0 : i32
    %c0_i32_1 = arith.constant 0 : i32
    return %c0_i32, %c0_i32_0 : i32, i32
  }
  func.func @transform_10(%arg0: i32) -> (i32, i32) {
    %c0_i32 = arith.constant 0 : i32
    %c0_i32_0 = arith.constant 0 : i32
    return %arg0, %c0_i32 : i32, i32
  }
}

</mosaic_0001>

<bundles_post_ra>
// kernel: tpu_custom_call.1
= control target key start
LH: loop header
LB: loop body
LE: loop exit
PB: predicated region body
PF: predicated region fallthrough
CT: control target
= control target key end

     0   :  { %15 = vsyncpa [#allocation3], 0  ;;  %s2085_s0 = inlined_call_operand.vmem [shape: f32[16,32], index: 0, kind: input, shape index: {}]   ;;  %s2086_s1 = inlined_call_operand.vmem [shape: f32[16,32], index: 1, kind: input, shape index: {}]   ;;  %s2087_s2 = inlined_call_operand.vmem [shape: f32[10,128], index: 2, kind: input, shape index: {}]   ;;  %s2088_s3 = inlined_call_operand.vmem [shape: bf16[32,32], index: 3, kind: input, shape index: {}]   ;;  %s2089_s4 = inlined_call_operand.vmem [shape: bf16[32,32], index: 4, kind: input, shape index: {}]   ;;  %s2090_s5 = inlined_call_operand.hbm [shape: bf16[32,32], index: 5, kind: input, shape index: {}]   ;;  %s2091_s6 = inlined_call_operand.hbm [shape: bf16[32,32], index: 6, kind: input, shape index: {}]   ;;  %s2092_s7 = inlined_call_operand.hbm [shape: bf16[32,32], index: 7, kind: input, shape index: {}]   ;;  %s2093_s8 = inlined_call_operand.hbm [shape: bf16[32,128], index: 8, kind: input, shape index: {}]   ;;  %s2094_s9 = inlined_call_operand.vmem [shape: bf16[128,32], index: 9, kind: input, shape index: {}]   ;;  %s2095_s10 = inlined_call_operand.hbm [shape: f32[16,32], index: 10, kind: output, shape index: {}]  }
   0x1   :  { %16 = vsyncpa [#allocation6], 0 }
   0x2   :  { %17 = vsyncpa [#allocation9], 0 }
   0x3   :  { %18 = vsyncpa [#allocation4], 0 }
   0x4   :  { %20 = vsyncpa [#allocation4 + $0x1], 0  ;;  %s1762_s13 = smov 0   ;;  %s1764_s14 = smov 0  }
   0x5   :  { %s1766_s15 = smov 0   ;;  %s1768_s16 = smov 0  }
   0x6 LB: > { %s1783_s17 = sadd.s32 4294967295, %s1693_s16   ;;  %s1238_s18 = sadd.s32 4294967294, %s1693_s16   ;;  %s1693_s16 = sphi %s1768_s16, %s2105_s16   ;;  %s1689_s15 = sphi %s1766_s15, %s2104_s15   ;;  %s1685_s14 = sphi %s1764_s14, %s2103_s14   ;;  %s1681_s13 = sphi %s1762_s13, %s2102_s13  }
   0x7   : > { %s1787_s19 = sadd.s32 1, %s1693_s16   ;;  %s253_s20 = sadd.s32 1, %s1689_s15 }
   0x8   : > { %s250_s21 = ssub.s32 %s1693_s16, %s1787_s19  ;;  %p263_p0 = scmp.ne.s32.totalorder %s1689_s15, %s1685_s14 }
   0x9   : > { %p251_p1 = scmp.eq.s32.totalorder %s250_s21, 0  ;;  %p264_p2 = scmp.eq.s32.totalorder %s1783_s17, 1 }
   0xa   : > { %p269_p3 = scmp.ne.s32.totalorder %s1685_s14, %s1681_s13  ;;  %p270_p4 = scmp.eq.s32.totalorder %s1238_s18, 1 }
   0xb   : > { %s1798_s22 = scalar_select %p251_p1, %s1689_s15, %s253_s20  }
   0xc   : > { %p1800_p5 = por %p264_p2, %p263_p0  ;;  %p1804_p6 = por %p270_p4, %p269_p3 }
   0xd   : > { %2096 = sst [smem:[#allocation15_spill]] %s1798_s22  ;;  %p1239_p7 = scmp.ge.s32.totalorder %s1693_s16, 1 }
   0xe   : > { %p277_p8 = scmp.lt.s32.totalorder %s1693_s16, 3  ;;  %p1435_p9 = scmp.eq.s32.totalorder %s1783_s17, 0 }
   0xf   : > { %s1695_s26 = smov [#allocation5]   ;;  %s1696_s29 = smov [#allocation2]  }
  0x10   : > { %p1811_p10 = pnand %p1239_p7, %p277_p8  ;;  %s311_s27 = sshll.u32 %s1695_s26, 4  ;;  %s312_s27 = int_to_ptr.vmem [resolvable:$true] %s311_s27 }
  0x11   : > { %s298_s30 = sshll.u32 %s1696_s29, 4  ;;  %s1697_s11 = smov [#allocation7]   ;;  %s299_s30 = int_to_ptr.vmem [resolvable:$true] %s298_s30 }
  0x12   : > { %p1418_p11 = pneg %p1811_p10  ;;  %s324_s12 = sshll.u32 %s1697_s11, 4  ;;  %s325_s12 = int_to_ptr.vmem [resolvable:$true] %s324_s12 }
  0x13   : > { %s1528_s18 = scalar_lea.vmem %s312_s27, 256  ;;  %p1536_p3 = scmp.lt.s32.totalorder %s312_s27, %s312_s27 }
  0x14   : > { %p1819_p12 = pnand %p1435_p9, %p1418_p11  ;;  %p1529_p0 = scmp.ne.s32.totalorder %s312_s27, %s1528_s18 }
  0x15   : > { %p1537_p4 = scmp.lt.s32.totalorder %s1528_s18, %s1528_s18 }
  0x16   : > { %p1519_p13 = pneg %p1819_p12 }
  0x17   : > { %p1538_p7 = por %p1537_p4, %p1536_p3 }
  0x18   : > { %p1531_p1 = pnand %p1529_p0, %p1519_p13 }
  0x1a   : > { %p1532_p2 = pneg %p1531_p1 }
  0x1c   : > { %p1539_p8 = pnand %p1538_p7, %p1532_p2 }
  0x1e   : > { %1542 = shalt.err (!%p1539_p8)
}
  0x1f   : > { %s1698_s20 = smov 64   ;;  %s1699_s21 = smov 4  }
  0x20   : > { %1424 = dma.hbm_to_vmem [thread:$0]  (!%p1819_p12), %s2091_s6, 256, %s312_s27, [#allocation6], %s1698_s20, %s1698_s20, %s1699_s21  }
  0x21   : > { %s1554_s11 = scalar_lea.vmem %s299_s30, 256  ;;  %p1562_p2 = scmp.lt.s32.totalorder %s299_s30, %s299_s30 }
  0x22   : > { %p1555_p11 = scmp.ne.s32.totalorder %s299_s30, %s1554_s11  ;;  %p1563_p3 = scmp.lt.s32.totalorder %s1554_s11, %s1554_s11 }
  0x24   : > { %p1557_p0 = pnand %p1555_p11, %p1519_p13  ;;  %p1564_p4 = por %p1563_p3, %p1562_p2 }
  0x26   : > { %p1558_p1 = pneg %p1557_p0 }
  0x28   : > { %p1565_p7 = pnand %p1564_p4, %p1558_p1 }
  0x2a   : > { %1568 = shalt.err (!%p1565_p7)
}
  0x2b   : > { %1421 = dma.hbm_to_vmem [thread:$0]  (!%p1819_p12), %s2090_s5, 256, %s299_s30, [#allocation3], %s1698_s20, %s1698_s20, %s1699_s21  }
  0x2c   : > { %s1580_s27 = scalar_lea.vmem %s325_s12, 256  ;;  %p1588_p2 = scmp.lt.s32.totalorder %s325_s12, %s325_s12 }
  0x2d   : > { %p1581_p8 = scmp.ne.s32.totalorder %s325_s12, %s1580_s27  ;;  %p1589_p1 = scmp.lt.s32.totalorder %s1580_s27, %s1580_s27 }
  0x2f   : > { %p1583_p11 = pnand %p1581_p8, %p1519_p13  ;;  %p1590_p3 = por %p1589_p1, %p1588_p2 }
  0x31   : > { %p1584_p0 = pneg %p1583_p11 }
  0x33   : > { %p1591_p4 = pnand %p1590_p3, %p1584_p0 }
  0x35   : > { %1594 = shalt.err (!%p1591_p4)
}
  0x36   : > { %1427 = dma.hbm_to_vmem [thread:$0]  (!%p1819_p12), %s2092_s7, 256, %s325_s12, [#allocation6], %s1698_s20, %s1698_s20, %s1699_s21  }
  0x37   : > { %s1700_s30 = smov [#allocation8]  }
  0x38   : > { %s337_s29 = sshll.u32 %s1700_s30, 4  ;;  %s338_s29 = int_to_ptr.vmem [resolvable:$true] %s337_s29 }
  0x39   : > { %s1606_s11 = scalar_lea.vmem %s338_s29, 256  ;;  %p1614_p0 = scmp.lt.s32.totalorder %s338_s29, %s338_s29 }
  0x3a   : > { %p1607_p7 = scmp.ne.s32.totalorder %s338_s29, %s1606_s11  ;;  %p1615_p2 = scmp.lt.s32.totalorder %s1606_s11, %s1606_s11 }
  0x3c   : > { %p1609_p8 = pnand %p1607_p7, %p1519_p13  ;;  %p1616_p1 = por %p1615_p2, %p1614_p0 }
  0x3e   : > { %p1610_p11 = pneg %p1609_p8 }
  0x40   : > { %p1617_p3 = pnand %p1616_p1, %p1610_p11 }
  0x42   : > { %1620 = shalt.err (!%p1617_p3)
}
  0x43   : > { %1430 = dma.hbm_to_vmem [thread:$0]  (!%p1819_p12), %s2093_s8, 256, %s338_s29, [#allocation9], %s1698_s20, %s1698_s20, %s1699_s21  }
  0x44   : > { %370 = sbr.rel (%p1811_p10) target bundleno = 2204 (0x89c), region = 60 }
  0x49   : > { %1664 = dma.done.wait (%p1435_p9), [#allocation3], 256  }
  0x4a   : > { %1666 = vsyncadd (%p1435_p9), [#allocation3], 4294967040 }
  0x4b   : > { %1668 = dma.done.wait (%p1435_p9), [#allocation6], 512  }
  0x4c   : > { %1670 = vsyncadd (%p1435_p9), [#allocation6], 4294966784 }
  0x4d   : > { %1672 = dma.done.wait (%p1435_p9), [#allocation9], 256  }
  0x4e   : > { %1674 = vsyncadd (%p1435_p9), [#allocation9], 4294967040  ;;  %p423_p10 = scmp.lt.s32.totalorder %s1783_s17, 1  ;;  %vm448_vm0 = vcmask 261120   ;;  %v1487_v7 = vld [vmem:[%s2089_s4 + $0x8] sm:$0xff]   ;;  %v1701_v8 = vmov 0.0  }
  0x4f   : > { %1324 = vmatprep.subr.bf16.mxu1 %v1701_v8  ;;  %vm1702_vm1 = vmmov 0   ;;  %v1488_v9 = vld [vmem:[%s2089_s4] sm:$0xff]   ;;  %1356 = vmatprep.subr.bf16.mxu0 %v1701_v8  ;;  %v1489_v19 = vld [vmem:[#allocation2 + $0x8] sm:$0xff]   ;;  %v1491_v24 = vld [vmem:[#allocation5 + $0x8] sm:$0xff]   ;;  %vm667_vm2 = vcmask 1043456   ;;  %vm751_vm3 = vcmask 195712  }
  0x50   : > { %s1885_s25 = scalar_select %p423_p10, %s1783_s17, 1  ;;  %1328 = vmatprep.mubr.msk.bf16.mxu1 %vm1702_vm1, %v1701_v8  ;;  %1325 = vmatpush3.bf16.msra.mxu1 %v1487_v7  ;;  %v1253_v14 = vld [vmem:[%s2087_s2 + $0x4] ss:$0 sm:$0xff]  ;;  %v1254_v16 = vld [vmem:[%s2087_s2 + $0x5] ss:$0 sm:$0xff]  ;;  %v1492_v25 = vld [vmem:[#allocation5] sm:$0xff]  }
  0x51   : > { %1326 = vmatprep.subr.bf16.mxu1 %v1701_v8  ;;  %1360 = vmatprep.mubr.msk.bf16.mxu0 %vm1702_vm1, %v1701_v8  ;;  %v1490_v22 = vld [vmem:[#allocation2] sm:$0xff]   ;;  %v1493_v36 = vld [vmem:[%s2088_s3 + $0x8] sm:$0xff]   ;;  %vm743_vm4 = vcmask 64512   ;;  %vm747_vm5 = vcmask 130112   ;;  %vm755_vm6 = vcmask 261312   ;;  %vm760_vm7 = vcmask 130048  }
  0x52   : > { %s1251_s28 = sshll.u32 %s1885_s25, 3  ;;  %v1259_v30 = vld [vmem:[%s2087_s2 + $0x1] ss:$0 sm:$0xff]  ;;  %v1255_v43 = vld [vmem:[%s2087_s2] ss:$0 sm:$0xff]  ;;  %vm762_vm8 = vcmask 195584  }
  0x53   : > { %s426_s27 = scalar_lea.vmem %s2085_s0, %s1251_s28  ;;  %s430_s22 = scalar_lea.vmem %s2086_s1, %s1251_s28  ;;  %v1494_v42 = vld [vmem:[%s2088_s3] sm:$0xff]  }
  0x54   : > { %v1893_v0 = vld [vmem:[%s426_s27] sm:$0xff]  ;;  %1327 = vmatpush3.bf16.msra.mxu1 %v1488_v9  ;;  %s1703_s27 = smov 112   ;;  %s1705_s25 = smov 104  }
  0x55   : > { %v449_v1 = vsel %vm448_vm0, %v1893_v0, 0.0  ;;  %1332 = vmatprep.subr.bf16.mxu1 %v1701_v8  ;;  %v433_v21 = vld [vmem:[%s430_s22] sm:$0xff]  ;;  %s1704_s22 = smov 120   ;;  %s420_s28 = sand.u32 1, %s1685_s14  }
  0x56   : > { %450 = vadd.xlane.f32.xlu0 %v449_v1  ;;  %v538_v23 = vpack.c.bf16 %v433_v21, %v433_v21  ;;  %v1263_v49 = vld [vmem:[%s2087_s2 + $0x2] ss:$0 sm:$0xff]  ;;  %s1250_s26 = sshll.u32 %s420_s28, 3  ;;  %s1291_s11 = sshll.u32 %s1783_s17, 7 }
  0x57   : > { %s422_s12 = scalar_lea.vmem [#allocation10], %s1250_s26  ;;  %s1113_s17 = scalar_lea.sflag [#allocation4], %s420_s28 }
  0x58   : > { %s1126_s18 = sshll.u32 %s422_s12, 4  ;;  %s2045_s18 = int_to_ptr.vmem [resolvable:$true] %s1126_s18 }
  0xdf   : > { %v451_v2 = vpop.xlane.xlu0 %450 }
  0xe0   : > { %v453_v3 = vmul.f32 0.03125, %v451_v2 }
  0xe2   : > { %v454_v4 = vsub.f32 %v1893_v0, %v453_v3 }
  0xe4   : > { %v455_v5 = vmul.f32 %v454_v4, %v454_v4 }
  0xe6   : > { %v456_v6 = vsel %vm448_vm0, %v455_v5, 0.0 }
  0xe7   : > { %457 = vadd.xlane.f32.xlu0 %v456_v6 }
 0x170   : > { %v458_v10 = vpop.xlane.xlu0 %457 }
 0x171   : > { %v459_v11 = vmul.f32 0.03125, %v458_v10 }
 0x173   : > { %v460_v12 = vadd.f32 1e-05, %v459_v11 }
 0x175   : > { %1507 = vrsqrt.f32 %v460_v12 }
 0x182   : > { %v1508_v13 = vpop.eup %1507 }
 0x183   : > { %v462_v15 = vmul.f32 %v1508_v13, %v454_v4 }
 0x185   : > { %v467_v17 = vmul.f32 %v1253_v14, %v462_v15 }
 0x187   : > { %v472_v18 = vadd.f32 %v1254_v16, %v467_v17 }
 0x189   : > { %v473_v20 = vpack.c.bf16 %v472_v18, %v472_v18 }
 0x18b   : > { %1329 = vmatmul.mubr.msk.bf16.vlgmr.msra.gmra.mxu1 %vm448_vm0, %v473_v20 }
 0x18c   : > { %1333 = vmatpush3.bf16.msra.mxu1 %v1489_v19  ;;  %1336 = vmatprep.mubr.msk.bf16.mxu1 %vm1702_vm1, %v1701_v8 }
 0x18d   : > { %1334 = vmatprep.subr.bf16.mxu1 %v1701_v8 }
 0x190   : > { %1335 = vmatpush3.bf16.msra.mxu1 %v1490_v22 }
 0x191   : > { %1340 = vmatprep.subr.bf16.mxu1 %v1701_v8 }
 0x193   : > { %1337 = vmatmul.mubr.msk.bf16.vlgmr.msra.gmra.mxu1 %vm448_vm0, %v538_v23 }
 0x194   : > { %1344 = vmatprep.mubr.msk.bf16.mxu1 %vm1702_vm1, %v1701_v8  ;;  %1341 = vmatpush3.bf16.msra.mxu1 %v1491_v24  ;;  %v1495_v24 = vld [vmem:[#allocation7 + $0x8] sm:$0xff]  }
 0x195   : > { %1342 = vmatprep.subr.bf16.mxu1 %v1701_v8 }
 0x198   : > { %1343 = vmatpush3.bf16.msra.mxu1 %v1492_v25  ;;  %v1496_v25 = vld [vmem:[#allocation7] sm:$0xff]  }
 0x199   : > { %1348 = vmatprep.subr.bf16.mxu1 %v1701_v8 }
 0x19b   : > { %1345 = vmatmul.mubr.msk.bf16.vlgmr.msra.gmra.mxu1 %vm448_vm0, %v538_v23 }
 0x19c   : > { %1352 = vmatprep.mubr.msk.bf16.mxu1 %vm1702_vm1, %v1701_v8 }
 0x24b   : > { %v531_v26 = vpop.f32.mrf.mxu1 }
 0x24c   : > { %v532_v45 = vadd.f32 %v1255_v43, %v531_v26 }
 0x24d   : > { %v1330_v27 = vpop.f32.mrf.mxu1 }
 0x24e   : > { %v537_v47 = vmul.f32 0.35355338, %v532_v45 }
 0x24f   : > { %v534_v28 = vpop.f32.mrf.mxu1 }
 0x250   : > { %v662_v48 = vpack.c.bf16 %v537_v47, %v537_v47 }
 0x251   : > { %v1331_v29 = vpop.f32.mrf.mxu1 }
 0x253   : > { %v596_v31 = vpop.f32.mrf.mxu1 }
 0x254   : > { %v597_v32 = vadd.f32 %v1259_v30, %v596_v31 }
 0x255   : > { %v1338_v33 = vpop.f32.mrf.mxu1 }
 0x256   : > { %v663_v34 = vpack.c.bf16 %v597_v32, %v597_v32 }
 0x257   : > { %v599_v35 = vpop.f32.mrf.mxu1 }
 0x258   : > { %v666_v37 = vrot.slane %v663_v34, 4 }
 0x259   : > { %v1339_v38 = vpop.f32.mrf.mxu1 }
 0x25a   : > { %v670_v39 = vsel %vm667_vm2, %v663_v34, %v666_v37 }
 0x25b   : > { %v691_v40 = vmul.bf16 %v1493_v36, %v670_v39  ;;  %v690_v44 = vmul.bf16 %v1494_v42, %v670_v39  ;;  %v656_v50 = vpop.f32.mrf.mxu1 }
 0x25c   : > { %v657_v51 = vadd.f32 %v1263_v49, %v656_v50 }
 0x25d   : > { %v701_v41 = vsel %vm448_vm0, %v691_v40, 0  ;;  %v698_v46 = vsel %vm448_vm0, %v690_v44, 0  ;;  %v1346_v52 = vpop.f32.mrf.mxu1  ;;  %v1274_v40 = vld [vmem:[%s2087_s2 + $0x3] ss:$0 sm:$0xff] }
 0x25e   : > { %1349 = vmatpush3.bf16.xpose.msra.mxu1 %v701_v41  ;;  %v664_v53 = vpack.c.bf16 %v657_v51, %v657_v51 }
 0x25f   : > { %1350 = vmatprep.subr.bf16.mxu1 %v1701_v8  ;;  %v659_v54 = vpop.f32.mrf.mxu1 }
 0x260   : > { %v673_v55 = vrot.slane %v664_v53, 4 }
 0x261   : > { %v1347_v56 = vpop.f32.mrf.mxu1 }
 0x262   : > { %v676_v57 = vsel %vm667_vm2, %v664_v53, %v673_v55  ;;  %v1497_v53 = vld [vmem:[#allocation8 + $0x8] sm:$0xff]  }
 0x263   : > { %v693_v58 = vmul.bf16 %v1493_v36, %v676_v57  ;;  %v692_v59 = vmul.bf16 %v1494_v42, %v676_v57 }
 0x265   : > { %1357 = vmatpush3.bf16.msra.mxu0 %v693_v58  ;;  %v1275_v58 = vld [vmem:[%s2087_s2 + $0x6] ss:$0 sm:$0xff] }
 0x266   : > { %1351 = vmatpush3.bf16.xpose.msra.mxu1 %v698_v46  ;;  %1358 = vmatprep.subr.bf16.mxu0 %v1701_v8 }
 0x267   : > { %1372 = vmatprep.subr.bf16.mxu1 %v1701_v8 }
 0x269   : > { %1359 = vmatpush3.bf16.msra.mxu0 %v692_v59 }
 0x26a   : > { %1364 = vmatprep.subr.bf16.mxu0 %v1701_v8 }
 0x26d   : > { %1353 = vmatmul.mubr.msk.bf16.vlgmr.msra.gmra.mxu1 %vm448_vm0, %v662_v48 }
 0x26e   : > { %1376 = vmatprep.mubr.msk.bf16.mxu1 %vm1702_vm1, %v1701_v8  ;;  %1373 = vmatpush3.bf16.msra.mxu1 %v1497_v53 }
 0x26f   : > { %1374 = vmatprep.subr.bf16.mxu1 %v1701_v8 }
 0x32d   : > { %v737_v60 = vpop.f32.mrf.mxu1 }
 0x32e   : > { %v752_v61 = vsel %vm751_vm3, %v737_v60, -inf  ;;  %v744_v62 = vsel %vm743_vm4, %v737_v60, -inf  ;;  %v748_v2 = vsel %vm747_vm5, %v737_v60, -inf  ;;  %v756_v4 = vsel %vm755_vm6, %v737_v60, -inf }
 0x32f   : > { %753 = vmax.xlane.f32.xlu0 %v752_v61  ;;  %745 = vmax.xlane.f32.xlu1 %v744_v62  ;;  %v1354_v63 = vpop.f32.mrf.mxu1 }
 0x331   : > { %v740_v1 = vpop.f32.mrf.mxu1 }
 0x332   : > { %v1499_v1 = vld [vmem:[%s2094_s9 + $0x38] sm:$0xff]  }
 0x333   : > { %749 = vmax.xlane.f32.xlu1 %v748_v2  ;;  %v1355_v3 = vpop.f32.mrf.mxu1  ;;  %v1500_v2 = vld [vmem:[%s2094_s9 + $0x30] sm:$0xff]  }
 0x334   : > { %v1501_v3 = vld [vmem:[%s2094_s9 + $0x28] sm:$0xff]  }
 0x337   : > { %757 = vmax.xlane.f32.xlu1 %v756_v4  ;;  %v1502_v4 = vld [vmem:[%s2094_s9 + $0x20] sm:$0xff]  }
 0x3b8   : > { %v746_v5 = vpop.xlane.xlu1 %745  ;;  %v754_v9 = vpop.xlane.xlu0 %753 }
 0x3bc   : > { %v750_v6 = vpop.xlane.xlu1 %749 }
 0x3bd   : > { %v759_v7 = vsel %vm743_vm4, %v746_v5, %v750_v6  ;;  %v1503_v5 = vld [vmem:[%s2094_s9 + $0x18] sm:$0xff]   ;;  %v1504_v6 = vld [vmem:[%s2094_s9 + $0x10] sm:$0xff]  }
 0x3be   : > { %v761_v10 = vsel %vm760_vm7, %v759_v7, %v754_v9  ;;  %v1505_v7 = vld [vmem:[%s2094_s9 + $0x8] sm:$0xff]   ;;  %v1506_v9 = vld [vmem:[%s2094_s9] sm:$0xff]  }
 0x3c0   : > { %v758_v11 = vpop.xlane.xlu1 %757 }
 0x3c1   : > { %v763_v12 = vsel %vm762_vm8, %v761_v10, %v758_v11  ;;  %v1277_v10 = vld [vmem:[%s2087_s2 + $0x8] ss:$0 sm:$0xff] }
 0x3c2   : > { %v764_v13 = vsub.f32 %v737_v60, %v763_v12  ;;  %v1276_v60 = vld [vmem:[%s2087_s2 + $0x7] ss:$0 sm:$0xff] }
 0x3c4   : > { %v765_v14 = vmul.f32 1.442695, %v764_v13 }
 0x3c6   : > { %1509 = vpow2.f32 %v765_v14 }
 0x3d3   : > { %v1510_v15 = vpop.eup %1509 }
 0x3d4   : > { %777 = vrot.lane.b32.xlu1 %v1510_v15, %s1703_s27  ;;  %771 = vrot.lane.b32.xlu0 %v1510_v15, %s1704_s22  ;;  %v792_v16 = vpack.c.bf16 %v1510_v15, %v1510_v15  ;;  %v767_v17 = vsel %vm743_vm4, %v1510_v15, 0.0  ;;  %s2043_s27 = scalar_lea.hbm %s2095_s10, %s1291_s11  ;;  %s1621_s22 = scalar_lea.vmem %s2045_s18, 128 }
 0x3d5   : > { %p1622_p9 = scmp.ne.s32.totalorder %s2045_s18, %s1621_s22 }
 0x3d6   : > { %1361 = vmatmul.mubr.msk.bf16.vlgmr.msra.gmra.mxu0 %vm448_vm0, %v792_v16 }
 0x3d7   : > { %1368 = vmatprep.mubr.msk.bf16.mxu0 %vm1702_vm1, %v1701_v8  ;;  %1365 = vmatpush3.bf16.msra.mxu0 %v1495_v24  ;;  %p1623_p12 = pnand %p1622_p9, %p1800_p5 }
 0x3d8   : > { %783 = vrot.lane.b32.xlu1 %v1510_v15, %s1705_s25  ;;  %1366 = vmatprep.subr.bf16.mxu0 %v1701_v8  ;;  %s1706_s25 = smov [#allocation10]  }
 0x3d9   : > { %p1624_p13 = pneg %p1623_p12  ;;  %s1625_s26 = sshll.u32 %s1706_s25, 4  ;;  %s1626_s26 = int_to_ptr.vmem [resolvable:$false] %s1625_s26 }
 0x3da   : > { %s1627_s30 = scalar_lea.vmem %s1626_s26, 256  ;;  %p1628_p4 = scmp.lt.s32.totalorder %s2045_s18, %s1626_s26 }
 0x3db   : > { %1367 = vmatpush3.bf16.msra.mxu0 %v1496_v25  ;;  %v1289_v25 = vld [vmem:[%s2087_s2 + $0x9] ss:$0 sm:$0xff]  ;;  %p1629_p7 = scmp.lt.s32.totalorder %s1627_s30, %s1621_s22 }
 0x3dc   : > { %1380 = vmatprep.subr.bf16.mxu0 %v1701_v8 }
 0x3dd   : > { %p1630_p8 = por %p1629_p7, %p1628_p4 }
 0x3df   : > { %p1631_p11 = pnand %p1630_p8, %p1624_p13 }
 0x3fc   : > { %768 = vadd.xlane.f32.xlu1 %v767_v17 }
 0x446   : > { %v778_v18 = vpop.permute.xlu1 %777  ;;  %v772_v19 = vpop.permute.xlu0 %771 }
 0x447   : > { %v774_v20 = vsel %vm743_vm4, %v772_v19, 0.0  ;;  %v780_v21 = vsel %vm743_vm4, %v778_v18, 0.0 }
 0x448   : > { %775 = vadd.xlane.f32.xlu0 %v774_v20 }
 0x44a   : > { %v784_v22 = vpop.permute.xlu1 %783 }
 0x44b   : > { %v786_v23 = vsel %vm743_vm4, %v784_v22, 0.0 }
 0x44c   : > { %781 = vadd.xlane.f32.xlu0 %v780_v21 }
 0x450   : > { %787 = vadd.xlane.f32.xlu0 %v786_v23 }
 0x485   : > { %v769_v32 = vpop.xlane.xlu1 %768 }
 0x496   : > { %v830_v26 = vpop.f32.mrf.mxu0 }
 0x498   : > { %v1362_v27 = vpop.f32.mrf.mxu0 }
 0x49a   : > { %v833_v28 = vpop.f32.mrf.mxu0 }
 0x49c   : > { %v1363_v29 = vpop.f32.mrf.mxu0 }
 0x4d1   : > { %v776_v30 = vpop.xlane.xlu0 %775 }
 0x4d2   : > { %v789_v33 = vsel %vm743_vm4, %v769_v32, %v776_v30 }
 0x4d5   : > { %v782_v31 = vpop.xlane.xlu0 %781 }
 0x4d6   : > { %v790_v34 = vsel %vm760_vm7, %v789_v33, %v782_v31 }
 0x4d9   : > { %v788_v35 = vpop.xlane.xlu0 %787 }
 0x4da   : > { %v791_v36 = vsel %vm762_vm8, %v790_v34, %v788_v35 }
 0x4db   : > { %1511 = vrcp.f32 %v791_v36 }
 0x4e8   : > { %v1512_v37 = vpop.eup %1511 }
 0x4e9   : > { %v837_v38 = vmul.f32 %v1512_v37, %v830_v26 }
 0x4eb   : > { %v838_v39 = vpack.c.bf16 %v837_v38, %v837_v38 }
 0x4ed   : > { %1369 = vmatmul.mubr.msk.bf16.vlgmr.msra.gmra.mxu0 %vm448_vm0, %v838_v39 }
 0x4ee   : > { %1396 = vmatprep.mubr.msk.bf16.mxu0 %vm1702_vm1, %v1701_v8  ;;  %1381 = vmatpush3.bf16.msra.mxu0 %v1499_v1 }
 0x4ef   : > { %1382 = vmatprep.subr.bf16.mxu0 %v1701_v8 }
 0x4f2   : > { %1383 = vmatpush3.bf16.msra.mxu0 %v1500_v2 }
 0x4f3   : > { %1384 = vmatprep.subr.bf16.mxu0 %v1701_v8 }
 0x4f6   : > { %1385 = vmatpush3.bf16.msra.mxu0 %v1501_v3 }
 0x4f7   : > { %1386 = vmatprep.subr.bf16.mxu0 %v1701_v8 }
 0x4fa   : > { %1387 = vmatpush3.bf16.msra.mxu0 %v1502_v4 }
 0x4fb   : > { %1388 = vmatprep.subr.bf16.mxu0 %v1701_v8 }
 0x4fe   : > { %1389 = vmatpush3.bf16.msra.mxu0 %v1503_v5 }
 0x4ff   : > { %1390 = vmatprep.subr.bf16.mxu0 %v1701_v8 }
 0x502   : > { %1391 = vmatpush3.bf16.msra.mxu0 %v1504_v6 }
 0x503   : > { %1392 = vmatprep.subr.bf16.mxu0 %v1701_v8 }
 0x506   : > { %1393 = vmatpush3.bf16.msra.mxu0 %v1505_v7 }
 0x507   : > { %1394 = vmatprep.subr.bf16.mxu0 %v1701_v8 }
 0x50a   : > { %1395 = vmatpush3.bf16.msra.mxu0 %v1506_v9 }
 0x5ad   : > { %v892_v41 = vpop.f32.mrf.mxu0 }
 0x5ae   : > { %v898_v42 = vadd.f32 %v892_v41, %v1893_v0  ;;  %v1498_v0 = vld [vmem:[#allocation8] sm:$0xff]  }
 0x5af   : > { %v1370_v43 = vpop.f32.mrf.mxu0  ;;  %1375 = vmatpush3.bf16.msra.mxu1 %v1498_v0 }
 0x5b0   : > { %v1986_v44 = vadd.f32 %v1274_v40, %v898_v42 }
 0x5b1   : > { %v895_v45 = vpop.f32.mrf.mxu0 }
 0x5b2   : > { %v904_v46 = vsel %vm448_vm0, %v1986_v44, 0.0 }
 0x5b3   : > { %905 = vadd.xlane.f32.xlu1 %v904_v46  ;;  %v1371_v47 = vpop.f32.mrf.mxu0 }
 0x63c   : > { %v906_v48 = vpop.xlane.xlu1 %905 }
 0x63d   : > { %v907_v49 = vmul.f32 0.03125, %v906_v48 }
 0x63f   : > { %v908_v50 = vsub.f32 %v1986_v44, %v907_v49 }
 0x641   : > { %v909_v51 = vmul.f32 %v908_v50, %v908_v50 }
 0x643   : > { %v910_v52 = vsel %vm448_vm0, %v909_v51, 0.0 }
 0x644   : > { %911 = vadd.xlane.f32.xlu0 %v910_v52 }
 0x6cd   : > { %v912_v54 = vpop.xlane.xlu0 %911 }
 0x6ce   : > { %v913_v55 = vmul.f32 0.03125, %v912_v54 }
 0x6d0   : > { %v914_v56 = vadd.f32 1e-05, %v913_v55 }
 0x6d2   : > { %1513 = vrsqrt.f32 %v914_v56 }
 0x6df   : > { %v1514_v57 = vpop.eup %1513 }
 0x6e0   : > { %v916_v59 = vmul.f32 %v1514_v57, %v908_v50 }
 0x6e2   : > { %v921_v61 = vmul.f32 %v1275_v58, %v916_v59 }
 0x6e4   : > { %v926_v62 = vadd.f32 %v1276_v60, %v921_v61 }
 0x6e6   : > { %v927_v63 = vpack.c.bf16 %v926_v62, %v926_v62 }
 0x6e8   : > { %1377 = vmatmul.mubr.msk.bf16.vlgmr.msra.gmra.mxu1 %vm448_vm0, %v927_v63 }
 0x7a8   : > { %v985_v11 = vpop.f32.mrf.mxu1 }
 0x7a9   : > { %v986_v12 = vadd.f32 %v1277_v10, %v985_v11 }
 0x7aa   : > { %v1378_v13 = vpop.f32.mrf.mxu1 }
 0x7ab   : > { %v992_v14 = vmul.f32 %v986_v12, %v986_v12  ;;  %v991_v8 = vmul.f32 0.5, %v986_v12 }
 0x7ac   : > { %v988_v15 = vpop.f32.mrf.mxu1 }
 0x7ad   : > { %v993_v16 = vmul.f32 %v992_v14, %v986_v12 }
 0x7ae   : > { %v1379_v17 = vpop.f32.mrf.mxu1 }
 0x7af   : > { %v994_v18 = vmul.f32 0.044715, %v993_v16 }
 0x7b1   : > { %v995_v19 = vadd.f32 %v994_v18, %v986_v12 }
 0x7b3   : > { %v996_v20 = vmul.f32 0.7978846, %v995_v19 }
 0x7b5   : > { %1515 = vtanh.f32 %v996_v20 }
 0x7c2   : > { %v1516_v21 = vpop.eup %1515 }
 0x7c3   : > { %v998_v22 = vadd.f32 1.0, %v1516_v21 }
 0x7c5   : > { %v999_v23 = vmul.f32 %v998_v22, %v991_v8 }
 0x7c7   : > { %v1000_v24 = vpack.c.bf16 %v999_v23, %v999_v23 }
 0x7c9   : > { %1397 = vmatmul.mubr.bf16.vlgmr.msra.gmra.mxu0 %v1000_v24 }
 0x889   : > { %v1099_v26 = vpop.f32.mrf.mxu0 }
 0x88a   : > { %v1105_v27 = vadd.f32 %v1099_v26, %v1986_v44 }
 0x88b   : > { %v1398_v28 = vpop.f32.mrf.mxu0 }
 0x88c   : > { %v1110_v29 = vadd.f32 %v1289_v25, %v1105_v27 }
 0x88d   : > { %v1102_v30 = vpop.f32.mrf.mxu0 }
 0x88e   : > { %1111 = vst.msk [vmem:[%s422_s12] sm:$0xff] %vm448_vm0, %v1110_v29 }
 0x88f   : > { %v1399_v31 = vpop.f32.mrf.mxu0 }
 0x890   : > { %1634 = shalt.err (!%p1631_p11)
}
 0x891   : > { %s1635_s29 = scalar_lea.hbm %s2043_s27, 128  ;;  %s1639_s12 = scalar_lea.hbm %s2095_s10, 256 }
 0x892   : > { %p1636_p0 = scmp.ne.s32.totalorder %s2043_s27, %s1635_s29  ;;  %p1640_p3 = scmp.lt.s32.totalorder %s2043_s27, %s2095_s10 }
 0x893   : > { %p1641_p10 = scmp.lt.s32.totalorder %s1639_s12, %s1635_s29 }
 0x894   : > { %p1637_p2 = pnand %p1636_p0, %p1800_p5 }
 0x895   : > { %p1642_p9 = por %p1641_p10, %p1640_p3 }
 0x896   : > { %p1638_p1 = pneg %p1637_p2 }
 0x898   : > { %p1643_p12 = pnand %p1642_p9, %p1638_p1 }
 0x89a   : > { %1646 = shalt.err (!%p1643_p12)
}
 0x89b   : > { %1416 = dma.vmem_to_hbm [thread:$0]  (%p1800_p5), %s2045_s18, 128, %s2043_s27, %s1113_s17  }
 0x89c PF: > { %p1443_p13 = scmp.ge.s32.totalorder %s1693_s16, 2  ;;  %s1138_s22 = sand.u32 1, %s1681_s13  }
 0x89d   : > { %s1139_s25 = scalar_lea.sflag [#allocation4], %s1138_s22 }
 0x89e   : > { %p1432_p4 = pnand %p1443_p13, %p1804_p6 }
 0x8a0   : > { %p1433_p7 = pneg %p1432_p4 }
 0x8a2   : > { %1676 = dma.done.wait (%p1433_p7), %s1139_s25, 128  }
 0x8a3   : > { %1678 = vsyncadd (%p1433_p7), %s1139_s25, 4294967168  ;;  %s2101_s26 = sld [smem:[#allocation15_spill]]  ;;  %p23_p8 = scmp.ge.s32.totalorder %s1787_s19, 4  }
 0x8a4   : > { %s2102_s13 = smov %s1685_s14  ;;  %s2103_s14 = smov %s1689_s15 }
 0x8a5   : > { %s2105_s16 = smov %s1787_s19  ;;  %25 = sbr.rel (!%p23_p8) target bundleno = 6 (0x6), region = 115 }
 0x8a9   : > { %s2104_s15 = smov %s2101_s26 }
 0x8aa   :  { %1144 = vsyncpa [#allocation3], 1 }
 0x8ab   :  { %1146 = vsyncpa [#allocation3 + $0x1], 1 }
 0x8ac   :  { %1147 = vsyncpa [#allocation6], 1 }
 0x8ad   :  { %1148 = vsyncpa [#allocation9], 1 }
 0x8ae   :  { %1149 = vsyncpa [#allocation4], 1 }
 0x8af   :  { %1151 = vsyncpa [#allocation4 + $0x1], 1 }

</bundles_post_ra>
